<compile_context>
chip_gen: v6e
topology: v6e:2x2x1
jax: 0.10.0
libtpu: 0.0.40
codegen_flags: <defaults>
</compile_context>

<pallas_src>
import jax
import jax.numpy as jnp
from jax.experimental import pallas as pl
from jax.experimental.pallas import tpu as pltpu


def _round_up(x, m):
    return ((x + m - 1) // m) * m


def _decoder_kernel(x_ref, w1_ref, b1_ref, w2_ref, b2_ref, w3_ref, b3_ref,
                    o_ref):
    # f32 -> bf16 cast on the VPU (free filler under DMA/MXU slack).
    x = x_ref[...].astype(jnp.bfloat16)

    # ---- layer 1: Linear(z_dim -> N) + Dropout(0.25)[eval = identity] + ReLU
    h1 = jnp.dot(x, w1_ref[...], preferred_element_type=jnp.float32)
    h1 = jnp.maximum(h1 + b1_ref[...], 0.0)
    # TODO(synk): training-mode Dropout(0.25) (pltpu.prng_seed/prng_random_bits
    # mask + 1/(1-p) scaling) is omitted; forward matches PyTorch eval().

    # ---- layer 2: Linear(N -> N) + Dropout(0.25)[eval = identity] + ReLU
    h2 = jnp.dot(h1.astype(jnp.bfloat16), w2_ref[...],
                 preferred_element_type=jnp.float32)
    h2 = jnp.maximum(h2 + b2_ref[...], 0.0)

    # ---- layer 3: Linear(N -> x_dim) + Sigmoid (sigmoid -> EUP slot, cheap)
    h3 = jnp.dot(h2.astype(jnp.bfloat16), w3_ref[...],
                 preferred_element_type=jnp.float32)
    o_ref[...] = jax.nn.sigmoid(h3 + b3_ref[...]).astype(o_ref.dtype)


def prepare_decoder_params(params, *, hidden_pad=128):
    """One-time weight prep, hoisted out of the forward pass.

    Pads the hidden dim N up to a lane multiple (zero pad is inert: padded
    hidden lanes stay 0 through bias-add(0) and ReLU) and casts the matmul
    operands to bf16. Contraction (z_dim) and output (x_dim) dims are left
    unpadded. Call this once; the forward re-uses the prepared arrays.
    """
    w1, b1, w2, b2, w3, b3 = params
    z_dim, N = w1.shape
    x_dim = w3.shape[1]
    npad = _round_up(N, hidden_pad)

    def pad2(a, rows, cols, dtype):
        return jnp.pad(a, ((0, rows - a.shape[0]),
                           (0, cols - a.shape[1]))).astype(dtype)

    w1p = pad2(w1, z_dim, npad, jnp.bfloat16)
    w2p = pad2(w2, npad, npad, jnp.bfloat16)
    w3p = pad2(w3, npad, x_dim, jnp.bfloat16)
    b1p = pad2(b1, 1, npad, jnp.float32)
    b2p = pad2(b2, 1, npad, jnp.float32)
    b3p = b3.astype(jnp.float32)
    return (w1p, b1p, w2p, b2p, w3p, b3p)


def decoder_forward(x, prepared_params, *, batch_tile=None):
    """x: [B, z_dim] float32 -> [B, x_dim] float32 (eval-mode forward)."""
    w1, b1, w2, b2, w3, b3 = prepared_params
    B, z_dim = x.shape
    assert w1.shape[0] == z_dim, "prepared W1 rows must match z_dim"
    npad = w1.shape[1]
    x_dim = w3.shape[1]

    if batch_tile is None:
        # Aim for >=2 grid steps (v7x: shard across both TensorCores, and
        # pipeline x/out DMA), but keep tiles big (per-step overhead ~0.35 us
        # dominates at these tiny shapes on v5e/v6e). Cap at 1024 rows.
        batch_tile = min(1024, max(16, _round_up(pl.cdiv(B, 2), 16)))
    batch_tile = min(_round_up(batch_tile, 16), _round_up(B, 16))
    grid = (pl.cdiv(B, batch_tile),)   # ragged last tile handled by Pallas

    # Constant index_map => weights/biases stay resident in VMEM across the
    # whole batch grid (one DMA per call, no per-step re-DMA).
    const = lambda shape: pl.BlockSpec(shape, lambda i: tuple(0 for _ in shape))

    flops = 2 * B * (z_dim * npad + npad * npad + npad * x_dim)
    bytes_accessed = (x.size * 4
                      + (w1.size + w2.size + w3.size) * 2
                      + (b1.size + b2.size + b3.size) * 4
                      + B * x_dim * 4)
    cost = pl.CostEstimate(flops=flops, transcendentals=B * x_dim,
                           bytes_accessed=bytes_accessed)

    # VMEM budget: double-buffered x/out tiles + (double-buffered) resident
    # weights, with headroom. Cap well below physical VMEM (~48 MiB on v7x,
    # never below the 32 MiB default).
    est = (2 * (batch_tile * z_dim * 4 + batch_tile * x_dim * 4)
           + 2 * ((z_dim * npad + npad * npad + npad * x_dim) * 2
                  + (2 * npad + x_dim) * 4))
    try:
        vmem_cap = int(pltpu.get_tpu_info().vmem_capacity_bytes)
    except Exception:
        vmem_cap = 64 * 1024 * 1024
    vmem_limit = int(min(max(32 * 1024 * 1024, 2 * est + (4 << 20)),
                         vmem_cap - (16 << 20)))

    return pl.pallas_call(
        _decoder_kernel,
        out_shape=jax.ShapeDtypeStruct((B, x_dim), jnp.float32),
        grid_spec=pltpu.PrefetchScalarGridSpec(
            num_scalar_prefetch=0,
            grid=grid,
            in_specs=[
                pl.BlockSpec((batch_tile, z_dim), lambda i: (i, 0)),  # x tile
                const((z_dim, npad)),   # W1
                const((1, npad)),       # b1
                const((npad, npad)),    # W2
                const((1, npad)),       # b2
                const((npad, x_dim)),   # W3
                const((1, x_dim)),      # b3
            ],
            out_specs=pl.BlockSpec((batch_tile, x_dim), lambda i: (i, 0)),
        ),
        compiler_params=pltpu.CompilerParams(
            dimension_semantics=("parallel",),
            vmem_limit_bytes=vmem_limit),
        cost_estimate=cost,
    )(x, w1, b1, w2, b2, w3, b3)


def init_decoder_params(key, x_dim, N, z_dim):
    """Deterministic PyTorch-style init: U(-1/sqrt(fan_in), +1/sqrt(fan_in))."""
    ks = jax.random.split(key, 6)

    def lin(kw, kb, fan_in, fan_out):
        bound = 1.0 / jnp.sqrt(fan_in)
        w = jax.random.uniform(kw, (fan_in, fan_out), jnp.float32, -bound, bound)
        b = jax.random.uniform(kb, (1, fan_out), jnp.float32, -bound, bound)
        return w, b

    w1, b1 = lin(ks[0], ks[1], z_dim, N)
    w2, b2 = lin(ks[2], ks[3], N, N)
    w3, b3 = lin(ks[4], ks[5], N, x_dim)
    return (w1, b1, w2, b2, w3, b3)


def decoder_reference(x, params):
    """Pure-JAX reference with the same bf16-matmul / f32-accumulate recipe."""
    w1, b1, w2, b2, w3, b3 = params

    def mm(a, w):
        return jnp.dot(a.astype(jnp.bfloat16), w.astype(jnp.bfloat16),
                       preferred_element_type=jnp.float32)

    h = jnp.maximum(mm(x, w1) + b1, 0.0)
    h = jnp.maximum(mm(h, w2) + b2, 0.0)
    return jax.nn.sigmoid(mm(h, w3) + b3)


if __name__ == "__main__":
    # Small MLP shapes implied by the module: z_dim -> N -> N -> x_dim.
    B, z_dim, N, x_dim = 512, 32, 64, 16

    key = jax.random.PRNGKey(0)
    k_param, k_x = jax.random.split(key)
    params = init_decoder_params(k_param, x_dim=x_dim, N=N, z_dim=z_dim)
    x = jax.random.normal(k_x, (B, z_dim), jnp.float32)

    # One-time param prep (hidden-dim pad + bf16 cast) hoisted out of the
    # forward, so the padding/cast passes never re-execute per call.
    prepared = prepare_decoder_params(params)

    fwd = jax.jit(decoder_forward)          # default tile -> grid=(2,) here
    out = jax.block_until_ready(fwd(x, prepared))

    ref = decoder_reference(x, params)
    assert out.shape == (B, x_dim)
    max_err = float(jnp.max(jnp.abs(out - ref)))
    assert jnp.allclose(out, ref, atol=1e-3, rtol=1e-3), max_err

    print("KERNEL_OK")
</pallas_src>

<mosaic_0001>
module attributes {stable_mosaic.version = 11 : i64} {
  func.func @_decoder_kernel(%arg0: i32, %arg1: memref<256x32xf32, #tpu.memory_space<vmem>>, %arg2: memref<32x128xbf16, #tpu.memory_space<vmem>>, %arg3: memref<1x128xf32, #tpu.memory_space<vmem>>, %arg4: memref<128x128xbf16, #tpu.memory_space<vmem>>, %arg5: memref<1x128xf32, #tpu.memory_space<vmem>>, %arg6: memref<128x16xbf16, #tpu.memory_space<vmem>>, %arg7: memref<1x16xf32, #tpu.memory_space<vmem>>, %arg8: memref<256x16xf32, #tpu.memory_space<vmem>>) attributes {dimension_semantics = [#tpu.dimension_semantics<parallel>], iteration_bounds = array<i64: 2>, scalar_prefetch = 0 : i64, scratch_operands = 0 : i64, tpu.core_type = #tpu.core_type<tc>, window_params = [{transform_indices = @transform_0, window_bounds = array<i64: 256, 32>}, {pipeline_mode = #tpu.pipeline_mode<synchronous>, transform_indices = @transform_1, window_bounds = array<i64: 32, 128>}, {pipeline_mode = #tpu.pipeline_mode<synchronous>, transform_indices = @transform_2, window_bounds = array<i64: 1, 128>}, {pipeline_mode = #tpu.pipeline_mode<synchronous>, transform_indices = @transform_3, window_bounds = array<i64: 128, 128>}, {pipeline_mode = #tpu.pipeline_mode<synchronous>, transform_indices = @transform_4, window_bounds = array<i64: 1, 128>}, {pipeline_mode = #tpu.pipeline_mode<synchronous>, transform_indices = @transform_5, window_bounds = array<i64: 128, 16>}, {pipeline_mode = #tpu.pipeline_mode<synchronous>, transform_indices = @transform_6, window_bounds = array<i64: 1, 16>}, {transform_indices = @transform_7, window_bounds = array<i64: 256, 16>}]} {
    %c0 = arith.constant 0 : index
    %c0_0 = arith.constant 0 : index
    %0 = vector.load %arg1[%c0, %c0_0] : memref<256x32xf32, #tpu.memory_space<vmem>>, vector<256x32xf32>
    %1 = arith.truncf %0 : vector<256x32xf32> to vector<256x32xbf16>
    %c0_1 = arith.constant 0 : index
    %c0_2 = arith.constant 0 : index
    %2 = vector.load %arg2[%c0_1, %c0_2] : memref<32x128xbf16, #tpu.memory_space<vmem>>, vector<32x128xbf16>
    %cst = arith.constant dense<0.000000e+00> : vector<256x128xf32>
    %3 = tpu.matmul %1, %2, %cst {dimension_numbers = #tpu.dot_dimension_numbers<[1], [0], [0], [1], [0, 0, 1, 1], [], []>} : vector<256x32xbf16>, vector<32x128xbf16>, vector<256x128xf32> -> vector<256x128xf32>
    %c0_3 = arith.constant 0 : index
    %c0_4 = arith.constant 0 : index
    %4 = vector.load %arg3[%c0_3, %c0_4] : memref<1x128xf32, #tpu.memory_space<vmem>>, vector<1x128xf32>
    %5 = vector.broadcast %4 : vector<1x128xf32> to vector<256x128xf32>
    %6 = arith.addf %3, %5 : vector<256x128xf32>
    %cst_5 = arith.constant 0.000000e+00 : f32
    %7 = vector.broadcast %cst_5 : f32 to vector<256x128xf32>
    %8 = arith.maximumf %6, %7 : vector<256x128xf32>
    %9 = arith.truncf %8 : vector<256x128xf32> to vector<256x128xbf16>
    %c0_6 = arith.constant 0 : index
    %c0_7 = arith.constant 0 : index
    %10 = vector.load %arg4[%c0_6, %c0_7] : memref<128x128xbf16, #tpu.memory_space<vmem>>, vector<128x128xbf16>
    %cst_8 = arith.constant dense<0.000000e+00> : vector<256x128xf32>
    %11 = tpu.matmul %9, %10, %cst_8 {dimension_numbers = #tpu.dot_dimension_numbers<[1], [0], [0], [1], [0, 0, 1, 1], [], []>} : vector<256x128xbf16>, vector<128x128xbf16>, vector<256x128xf32> -> vector<256x128xf32>
    %c0_9 = arith.constant 0 : index
    %c0_10 = arith.constant 0 : index
    %12 = vector.load %arg5[%c0_9, %c0_10] : memref<1x128xf32, #tpu.memory_space<vmem>>, vector<1x128xf32>
    %13 = vector.broadcast %12 : vector<1x128xf32> to vector<256x128xf32>
    %14 = arith.addf %11, %13 : vector<256x128xf32>
    %cst_11 = arith.constant 0.000000e+00 : f32
    %15 = vector.broadcast %cst_11 : f32 to vector<256x128xf32>
    %16 = arith.maximumf %14, %15 : vector<256x128xf32>
    %17 = arith.truncf %16 : vector<256x128xf32> to vector<256x128xbf16>
    %c0_12 = arith.constant 0 : index
    %c0_13 = arith.constant 0 : index
    %18 = vector.load %arg6[%c0_12, %c0_13] : memref<128x16xbf16, #tpu.memory_space<vmem>>, vector<128x16xbf16>
    %cst_14 = arith.constant dense<0.000000e+00> : vector<256x16xf32>
    %19 = tpu.matmul %17, %18, %cst_14 {dimension_numbers = #tpu.dot_dimension_numbers<[1], [0], [0], [1], [0, 0, 1, 1], [], []>} : vector<256x128xbf16>, vector<128x16xbf16>, vector<256x16xf32> -> vector<256x16xf32>
    %c0_15 = arith.constant 0 : index
    %c0_16 = arith.constant 0 : index
    %20 = vector.load %arg7[%c0_15, %c0_16] : memref<1x16xf32, #tpu.memory_space<vmem>>, vector<1x16xf32>
    %21 = vector.broadcast %20 : vector<1x16xf32> to vector<256x16xf32>
    %22 = arith.addf %19, %21 : vector<256x16xf32>
    %23 = arith.negf %22 : vector<256x16xf32>
    %24 = math.exp %23 : vector<256x16xf32>
    %cst_17 = arith.constant 1.000000e+00 : f32
    %25 = vector.broadcast %cst_17 : f32 to vector<256x16xf32>
    %26 = arith.addf %25, %24 : vector<256x16xf32>
    %27 = arith.divf %25, %26 : vector<256x16xf32>
    %c0_18 = arith.constant 0 : index
    %c0_19 = arith.constant 0 : index
    %28 = vector.load %arg8[%c0_18, %c0_19] : memref<256x16xf32, #tpu.memory_space<vmem>>, vector<256x16xf32>
    tpu.vector_store %arg8[%c0_18, %c0_19], %27 {strides = array<i32>} : memref<256x16xf32, #tpu.memory_space<vmem>>, vector<256x16xf32>,
    return
  }
  func.func @transform_0(%arg0: i32) -> (i32, i32) {
    %c0_i32 = arith.constant 0 : i32
    %c0_i32_0 = arith.constant 0 : i32
    return %arg0, %c0_i32 : i32, i32
  }
  func.func @transform_1(%arg0: i32) -> (i32, i32) {
    %c0_i32 = arith.constant 0 : i32
    %c0_i32_0 = arith.constant 0 : i32
    %c0_i32_1 = arith.constant 0 : i32
    return %c0_i32, %c0_i32_0 : i32, i32
  }
  func.func @transform_2(%arg0: i32) -> (i32, i32) {
    %c0_i32 = arith.constant 0 : i32
    %c0_i32_0 = arith.constant 0 : i32
    %c0_i32_1 = arith.constant 0 : i32
    return %c0_i32, %c0_i32_0 : i32, i32
  }
  func.func @transform_3(%arg0: i32) -> (i32, i32) {
    %c0_i32 = arith.constant 0 : i32
    %c0_i32_0 = arith.constant 0 : i32
    %c0_i32_1 = arith.constant 0 : i32
    return %c0_i32, %c0_i32_0 : i32, i32
  }
  func.func @transform_4(%arg0: i32) -> (i32, i32) {
    %c0_i32 = arith.constant 0 : i32
    %c0_i32_0 = arith.constant 0 : i32
    %c0_i32_1 = arith.constant 0 : i32
    return %c0_i32, %c0_i32_0 : i32, i32
  }
  func.func @transform_5(%arg0: i32) -> (i32, i32) {
    %c0_i32 = arith.constant 0 : i32
    %c0_i32_0 = arith.constant 0 : i32
    %c0_i32_1 = arith.constant 0 : i32
    return %c0_i32, %c0_i32_0 : i32, i32
  }
  func.func @transform_6(%arg0: i32) -> (i32, i32) {
    %c0_i32 = arith.constant 0 : i32
    %c0_i32_0 = arith.constant 0 : i32
    %c0_i32_1 = arith.constant 0 : i32
    return %c0_i32, %c0_i32_0 : i32, i32
  }
  func.func @transform_7(%arg0: i32) -> (i32, i32) {
    %c0_i32 = arith.constant 0 : i32
    %c0_i32_0 = arith.constant 0 : i32
    return %arg0, %c0_i32 : i32, i32
  }
}

</mosaic_0001>

<bundles_post_ra>
// kernel: decoder_forward.1
= control target key start
LH: loop header
LB: loop body
LE: loop exit
PB: predicated region body
PF: predicated region fallthrough
CT: control target
= control target key end

     0   :  { %s1889_s24 = smov 0   ;;  %s2209_s0 = inlined_call_operand.vmem [shape: f32[512,32], index: 0, kind: input, shape index: {}]   ;;  %s2210_s1 = inlined_call_operand.vmem [shape: bf16[32,128], index: 1, kind: input, shape index: {}]   ;;  %s2211_s2 = inlined_call_operand.vmem [shape: f32[1,128], index: 2, kind: input, shape index: {}]   ;;  %s2212_s3 = inlined_call_operand.vmem [shape: bf16[128,128], index: 3, kind: input, shape index: {}]   ;;  %s2213_s4 = inlined_call_operand.vmem [shape: f32[1,128], index: 4, kind: input, shape index: {}]   ;;  %s2214_s5 = inlined_call_operand.vmem [shape: bf16[128,16], index: 5, kind: input, shape index: {}]   ;;  %s2215_s6 = inlined_call_operand.vmem [shape: f32[1,16], index: 6, kind: input, shape index: {}]   ;;  %s2216_s7 = inlined_call_operand.vmem [shape: f32[512,16], index: 7, kind: output, shape index: {}]  }
   0x1 LB: > { %s1405_s25 = sadd.s32 4294967295, %s1847_s24   ;;  %p1409_p0 = scmp.ge.s32.totalorder %s1847_s24, 1  ;;  %s1847_s24 = sphi %s1889_s24, %s17_s24  }
   0x2   : > { %p238_p1 = scmp.lt.s32.totalorder %s1847_s24, 3 }
   0x4   : > { %p239_p2 = pnand %p1409_p0, %p238_p1 }
   0x5   : > { %s1410_s28 = sshll.u32 (!%p239_p2), %s1405_s25, 5 }
   0x6   : > { %242 = sbr.rel (%p239_p2) target bundleno = 723 (0x2d3), region = 48  ;;  %p271_p3 = scmp.lt.s32.totalorder (!%p239_p2), %s1410_s28, 63 }
   0xb   : > { %v1695_v0 = vld [vmem:[%s2210_s1 + $0x8] sm:$0xff]   ;;  %v1696_v1 = vld [vmem:[%s2210_s1] sm:$0xff]   ;;  %s2218_s28 = smov (!%p271_p3, %s1410_s28), 63  ;;  %v1697_v2 = vld [vmem:[%s2212_s3 + $0x38] sm:$0xff]   ;;  %vm354_vm0 = vcmask 261120   ;;  %vm1316_vm1 = vcmask 130048  }
   0xc   : > { %1551 = vmatprep.subr.bf16.mxu0 %v1695_v0  ;;  %1683 = vmatprep.subr.bf16.mxu1 %v1695_v0  ;;  %s1411_s10 = sshll.u32 %s2218_s28, 3  ;;  %v1698_v24 = vld [vmem:[%s2212_s3 + $0x30] sm:$0xff]   ;;  %v1699_v30 = vld [vmem:[%s2212_s3 + $0x28] sm:$0xff]   ;;  %v1700_v38 = vld [vmem:[%s2212_s3 + $0x20] sm:$0xff]  }
   0xd   : > { %1552 = vmatpush3.bf16.msra.mxu0 %v1695_v0  ;;  %1685 = vmatpush3.bf16.msra.mxu1 %v1695_v0  ;;  %s1914_s13 = scalar_lea.vmem %s2209_s0, %s1411_s10  ;;  %v1701_v46 = vld [vmem:[%s2212_s3 + $0x18] sm:$0xff]   ;;  %v1702_v55 = vld [vmem:[%s2212_s3 + $0x10] sm:$0xff]   ;;  %v1703_v56 = vld [vmem:[%s2212_s3 + $0x8] sm:$0xff]   ;;  %s2124_s12 = scalar_lea.vmem %s2216_s7, %s1411_s10 }
   0xe   : > { %1553 = vmatprep.subr.bf16.mxu0 %v1696_v1  ;;  %1684 = vmatprep.subr.bf16.mxu1 %v1696_v1  ;;  %v283_v3 = vld [vmem:[%s1914_s13] sm:$0xff]  ;;  %v284_v4 = vld [vmem:[%s1914_s13 + $0x8] sm:$0xff]  ;;  %v285_v5 = vld [vmem:[%s1914_s13 + $0x10] sm:$0xff] }
   0xf   : > { %v315_v6 = vpack.c.bf16 %v284_v4, %v283_v3  ;;  %v286_v7 = vld [vmem:[%s1914_s13 + $0x18] sm:$0xff]  ;;  %v287_v8 = vld [vmem:[%s1914_s13 + $0x20] sm:$0xff]  ;;  %v288_v9 = vld [vmem:[%s1914_s13 + $0x28] sm:$0xff] }
  0x10   : > { %v316_v10 = vpack.c.bf16 %v286_v7, %v285_v5  ;;  %v317_v11 = vpack.c.bf16 %v288_v9, %v287_v8  ;;  %v289_v12 = vld [vmem:[%s1914_s13 + $0x30] sm:$0xff]  ;;  %v290_v13 = vld [vmem:[%s1914_s13 + $0x38] sm:$0xff]  ;;  %v291_v14 = vld [vmem:[%s1914_s13 + $0x40] sm:$0xff] }
  0x11   : > { %1554 = vmatpush3.bf16.msra.mxu0 %v1696_v1  ;;  %1686 = vmatpush3.bf16.msra.mxu1 %v1696_v1  ;;  %v292_v15 = vld [vmem:[%s1914_s13 + $0x48] sm:$0xff]  ;;  %v299_v16 = vld [vmem:[%s1914_s13 + $0x80] sm:$0xff]  ;;  %v301_v19 = vld [vmem:[%s1914_s13 + $0x90] sm:$0xff]  ;;  %v318_v25 = vpack.c.bf16 %v290_v13, %v289_v12 }
  0x12   : > { %1587 = vmatprep.subr.bf16.mxu1 %v1697_v2  ;;  %1555 = vmatprep.mubr.msk.bf16.mxu0 %vm354_vm0, %v315_v6  ;;  %v300_v17 = vld [vmem:[%s1914_s13 + $0x88] sm:$0xff]  ;;  %v302_v20 = vld [vmem:[%s1914_s13 + $0x98] sm:$0xff]  ;;  %v303_v21 = vld [vmem:[%s1914_s13 + $0xa0] sm:$0xff]  ;;  %v319_v27 = vpack.c.bf16 %v292_v15, %v291_v14 }
  0x13   : > { %v323_v18 = vpack.c.bf16 %v300_v17, %v299_v16  ;;  %v324_v22 = vpack.c.bf16 %v302_v20, %v301_v19  ;;  %v304_v23 = vld [vmem:[%s1914_s13 + $0xa8] sm:$0xff]  ;;  %v305_v28 = vld [vmem:[%s1914_s13 + $0xb0] sm:$0xff]  ;;  %v306_v29 = vld [vmem:[%s1914_s13 + $0xb8] sm:$0xff] }
  0x14   : > { %1556 = vmatmul.mubr.msk.bf16.vlgmr.msra.gmra.mxu0 %vm354_vm0, %v316_v10  ;;  %v325_v26 = vpack.c.bf16 %v304_v23, %v303_v21  ;;  %v307_v31 = vld [vmem:[%s1914_s13 + $0xc0] sm:$0xff]  ;;  %v308_v32 = vld [vmem:[%s1914_s13 + $0xc8] sm:$0xff]  ;;  %v293_v33 = vld [vmem:[%s1914_s13 + $0x50] sm:$0xff]  ;;  %v326_v37 = vpack.c.bf16 %v306_v29, %v305_v28 }
  0x15   : > { %1559 = vmatprep.mubr.msk.bf16.mxu0 %vm354_vm0, %v317_v11  ;;  %1571 = vmatprep.mubr.msk.bf16.mxu1 %vm354_vm0, %v323_v18  ;;  %v294_v34 = vld [vmem:[%s1914_s13 + $0x58] sm:$0xff]  ;;  %v295_v35 = vld [vmem:[%s1914_s13 + $0x60] sm:$0xff]  ;;  %v296_v36 = vld [vmem:[%s1914_s13 + $0x68] sm:$0xff]  ;;  %v327_v39 = vpack.c.bf16 %v308_v32, %v307_v31 }
  0x16   : > { %1572 = vmatmul.mubr.msk.bf16.vlgmr.msra.gmra.mxu1 %vm354_vm0, %v324_v22  ;;  %v320_v40 = vpack.c.bf16 %v294_v34, %v293_v33  ;;  %v321_v41 = vpack.c.bf16 %v296_v36, %v295_v35  ;;  %v309_v42 = vld [vmem:[%s1914_s13 + $0xd0] sm:$0xff]  ;;  %v310_v43 = vld [vmem:[%s1914_s13 + $0xd8] sm:$0xff]  ;;  %v311_v44 = vld [vmem:[%s1914_s13 + $0xe0] sm:$0xff] }
  0x17   : > { %1575 = vmatprep.mubr.msk.bf16.mxu1 %vm354_vm0, %v325_v26  ;;  %1588 = vmatpush3.bf16.msra.mxu1 %v1697_v2  ;;  %v312_v45 = vld [vmem:[%s1914_s13 + $0xe8] sm:$0xff]  ;;  %v297_v47 = vld [vmem:[%s1914_s13 + $0x70] sm:$0xff]  ;;  %v298_v48 = vld [vmem:[%s1914_s13 + $0x78] sm:$0xff]  ;;  %v328_v49 = vpack.c.bf16 %v310_v43, %v309_v42 }
  0x18   : > { %1589 = vmatprep.subr.bf16.mxu1 %v1698_v24  ;;  %v329_v50 = vpack.c.bf16 %v312_v45, %v311_v44  ;;  %v322_v51 = vpack.c.bf16 %v298_v48, %v297_v47  ;;  %v313_v52 = vld [vmem:[%s1914_s13 + $0xf0] sm:$0xff]  ;;  %v314_v53 = vld [vmem:[%s1914_s13 + $0xf8] sm:$0xff]  ;;  %v1704_v57 = vld [vmem:[%s2212_s3] sm:$0xff]  }
  0x19   : > { %v330_v54 = vpack.c.bf16 %v314_v53, %v313_v52  ;;  %v1705_v58 = vld [vmem:[%s2214_s5 + $0x38] sm:$0xff]   ;;  %v1706_v59 = vld [vmem:[%s2214_s5 + $0x30] sm:$0xff]   ;;  %v1707_v60 = vld [vmem:[%s2214_s5 + $0x28] sm:$0xff]  }
  0x1a   : > { %1635 = vmatprep.subr.bf16.mxu0 %v1705_v58  ;;  %v1708_v61 = vld [vmem:[%s2214_s5 + $0x20] sm:$0xff]   ;;  %v1709_v62 = vld [vmem:[%s2214_s5 + $0x18] sm:$0xff]  }
  0x1b   : > { %1590 = vmatpush3.bf16.msra.mxu1 %v1698_v24  ;;  %1636 = vmatpush3.bf16.msra.mxu0 %v1705_v58  ;;  %v2003_v1 = vld [vmem:[%s2211_s2] ss:$0 sm:$0xff] }
  0x1c   : > { %1560 = vmatmul.mubr.msk.bf16.gmra.mxu0 %vm354_vm0, %v318_v25  ;;  %1591 = vmatprep.subr.bf16.mxu1 %v1699_v30 }
  0x1d   : > { %1563 = vmatprep.mubr.msk.bf16.mxu0 %vm354_vm0, %v319_v27  ;;  %1637 = vmatprep.subr.bf16.mxu0 %v1706_v59 }
  0x1e   : > { %1576 = vmatmul.mubr.msk.bf16.gmra.mxu1 %vm354_vm0, %v326_v37 }
  0x1f   : > { %1579 = vmatprep.mubr.msk.bf16.mxu1 %vm354_vm0, %v327_v39  ;;  %1592 = vmatpush3.bf16.msra.mxu1 %v1699_v30 }
  0x20   : > { %1593 = vmatprep.subr.bf16.mxu1 %v1700_v38  ;;  %1638 = vmatpush3.bf16.msra.mxu0 %v1706_v59 }
  0x21   : > { %1639 = vmatprep.subr.bf16.mxu0 %v1707_v60 }
  0x23   : > { %1594 = vmatpush3.bf16.msra.mxu1 %v1700_v38 }
  0x24   : > { %1564 = vmatmul.mubr.msk.bf16.gmra.mxu0 %vm354_vm0, %v320_v40  ;;  %1595 = vmatprep.subr.bf16.mxu1 %v1701_v46 }
  0x25   : > { %1567 = vmatprep.mubr.msk.bf16.mxu0 %vm354_vm0, %v321_v41  ;;  %1640 = vmatpush3.bf16.msra.mxu0 %v1707_v60 }
  0x26   : > { %1580 = vmatmul.mubr.msk.bf16.gmra.mxu1 %vm354_vm0, %v328_v49  ;;  %1641 = vmatprep.subr.bf16.mxu0 %v1708_v61 }
  0x27   : > { %1583 = vmatprep.mubr.msk.bf16.mxu1 %vm354_vm0, %v329_v50  ;;  %1596 = vmatpush3.bf16.msra.mxu1 %v1701_v46 }
  0x28   : > { %1597 = vmatprep.subr.bf16.mxu1 %v1702_v55 }
  0x29   : > { %1642 = vmatpush3.bf16.msra.mxu0 %v1708_v61 }
  0x2a   : > { %1643 = vmatprep.subr.bf16.mxu0 %v1709_v62 }
  0x2b   : > { %1598 = vmatpush3.bf16.msra.mxu1 %v1702_v55 }
  0x2c   : > { %1568 = vmatmul.mubr.msk.bf16.gmra.mxu0 %vm354_vm0, %v322_v51  ;;  %1599 = vmatprep.subr.bf16.mxu1 %v1703_v56 }
  0x2d   : > { %1644 = vmatpush3.bf16.msra.mxu0 %v1709_v62 }
  0x2e   : > { %1584 = vmatmul.mubr.msk.bf16.gmra.mxu1 %vm354_vm0, %v330_v54 }
  0x2f   : > { %1600 = vmatpush3.bf16.msra.mxu1 %v1703_v56 }
  0x30   : > { %1601 = vmatprep.subr.bf16.mxu1 %v1704_v57 }
  0x33   : > { %1602 = vmatpush3.bf16.msra.mxu1 %v1704_v57 }
  0xd4   : > { %v1557_v63 = vpop.f32.mrf.mxu0 }
  0xd5   : > { %v446_v6 = vadd.f32 %v1557_v63, %v2003_v1 }
  0xd6   : > { %v437_v0 = vpop.f32.mrf.mxu0  ;;  %v2007_v5 = vpop.f32.mrf.mxu1 }
  0xd7   : > { %v438_v3 = vadd.f32 %v2003_v1, %v437_v0  ;;  %v566_v15 = vmax.f32 %v446_v6, 0.0 }
  0xd8   : > { %v1558_v2 = vpop.f32.mrf.mxu0  ;;  %v501_v9 = vpop.f32.mrf.mxu1 }
  0xd9   : > { %v449_v4 = vadd.f32 %v1558_v2, %v2003_v1  ;;  %v564_v12 = vmax.f32 %v438_v3, 0.0  ;;  %v502_v53 = vadd.f32 %v2003_v1, %v501_v9 }
  0xda   : > { %v440_v7 = vpop.f32.mrf.mxu0  ;;  %v2011_v14 = vpop.f32.mrf.mxu1 }
  0xdb   : > { %v441_v8 = vadd.f32 %v2003_v1, %v440_v7  ;;  %v567_v10 = vmax.f32 %v449_v4, 0.0  ;;  %v580_v62 = vmax.f32 %v502_v53, 0.0  ;;  %v2064_v53 = vld [vmem:[%s2213_s4] ss:$0 sm:$0xff] }
  0xdc   : > { %v1561_v11 = vpop.f32.mrf.mxu0  ;;  %v504_v18 = vpop.f32.mrf.mxu1 }
  0xdd   : > { %v565_v13 = vmax.f32 %v441_v8, 0.0  ;;  %v597_v19 = vpack.c.bf16 %v567_v10, %v566_v15  ;;  %v462_v24 = vadd.f32 %v1561_v11, %v2003_v1  ;;  %v505_v54 = vadd.f32 %v2003_v1, %v504_v18 }
  0xde   : > { %v453_v16 = vpop.f32.mrf.mxu0  ;;  %v2015_v23 = vpop.f32.mrf.mxu1  ;;  %v513_v15 = vadd.f32 %v2011_v14, %v2003_v1 }
  0xdf   : > { %v596_v17 = vpack.c.bf16 %v565_v13, %v564_v12  ;;  %v454_v21 = vadd.f32 %v2003_v1, %v453_v16  ;;  %v570_v33 = vmax.f32 %v462_v24, 0.0  ;;  %v581_v0 = vmax.f32 %v505_v54, 0.0 }
  0xe0   : > { %v1562_v20 = vpop.f32.mrf.mxu0  ;;  %v517_v27 = vpop.f32.mrf.mxu1  ;;  %v510_v12 = vadd.f32 %v2007_v5, %v2003_v1  ;;  %v526_v5 = vadd.f32 %v2015_v23, %v2003_v1 }
  0xe1   : > { %v465_v22 = vadd.f32 %v1562_v20, %v2003_v1  ;;  %1603 = vmatprep.mubr.bf16.mxu1 %v596_v17  ;;  %v568_v30 = vmax.f32 %v454_v21, 0.0  ;;  %v604_v9 = vpack.c.bf16 %v581_v0, %v580_v62  ;;  %v518_v10 = vadd.f32 %v2003_v1, %v517_v27 }
  0xe2   : > { %v456_v25 = vpop.f32.mrf.mxu0  ;;  %1604 = vmatmul.mubr.bf16.vlgmr.msra.gmra.mxu1 %v597_v19  ;;  %v2019_v32 = vpop.f32.mrf.mxu1  ;;  %v582_v19 = vmax.f32 %v510_v12, 0.0  ;;  %v583_v20 = vmax.f32 %v513_v15, 0.0 }
  0xe3   : > { %v457_v26 = vadd.f32 %v2003_v1, %v456_v25  ;;  %v571_v28 = vmax.f32 %v465_v22, 0.0  ;;  %v584_v17 = vmax.f32 %v518_v10, 0.0  ;;  %v529_v14 = vadd.f32 %v2019_v32, %v2003_v1 }
  0xe4   : > { %v1565_v29 = vpop.f32.mrf.mxu0  ;;  %v520_v36 = vpop.f32.mrf.mxu1 }
  0xe5   : > { %v569_v31 = vmax.f32 %v457_v26, 0.0  ;;  %v599_v37 = vpack.c.bf16 %v571_v28, %v570_v33  ;;  %v478_v42 = vadd.f32 %v1565_v29, %v2003_v1  ;;  %v521_v11 = vadd.f32 %v2003_v1, %v520_v36 }
  0xe6   : > { %v469_v34 = vpop.f32.mrf.mxu0  ;;  %v2023_v41 = vpop.f32.mrf.mxu1  ;;  %v605_v26 = vpack.c.bf16 %v583_v20, %v582_v19 }
  0xe7   : > { %v598_v35 = vpack.c.bf16 %v569_v31, %v568_v30  ;;  %v470_v39 = vadd.f32 %v2003_v1, %v469_v34  ;;  %v574_v50 = vmax.f32 %v478_v42, 0.0  ;;  %v585_v18 = vmax.f32 %v521_v11, 0.0 }
  0xe8   : > { %v1566_v38 = vpop.f32.mrf.mxu0  ;;  %v533_v47 = vpop.f32.mrf.mxu1  ;;  %v586_v30 = vmax.f32 %v526_v5, 0.0  ;;  %v587_v31 = vmax.f32 %v529_v14, 0.0  ;;  %v542_v23 = vadd.f32 %v2023_v41, %v2003_v1  ;;  %v1710_v41 = vld [vmem:[%s2214_s5 + $0x10] sm:$0xff]  }
  0xe9   : > { %v481_v40 = vadd.f32 %v1566_v38, %v2003_v1  ;;  %1607 = vmatprep.mubr.bf16.mxu1 %v598_v35  ;;  %v572_v48 = vmax.f32 %v470_v39, 0.0  ;;  %v606_v22 = vpack.c.bf16 %v585_v18, %v584_v17  ;;  %v534_v24 = vadd.f32 %v2003_v1, %v533_v47  ;;  %1645 = vmatprep.subr.bf16.mxu0 %v1710_v41 }
  0xea   : > { %v472_v43 = vpop.f32.mrf.mxu0  ;;  %1608 = vmatmul.mubr.bf16.gmra.mxu1 %v599_v37  ;;  %v1582_v57 = vpop.f32.mrf.mxu1  ;;  %v607_v37 = vpack.c.bf16 %v587_v31, %v586_v30  ;;  %1646 = vmatpush3.bf16.msra.mxu0 %v1710_v41 }
  0xeb   : > { %v473_v44 = vadd.f32 %v2003_v1, %v472_v43  ;;  %v575_v45 = vmax.f32 %v481_v40, 0.0  ;;  %v588_v28 = vmax.f32 %v534_v24, 0.0  ;;  %v545_v38 = vadd.f32 %v1582_v57, %v2003_v1 }
  0xec   : > { %v1569_v46 = vpop.f32.mrf.mxu0  ;;  %v536_v3 = vpop.f32.mrf.mxu1  ;;  %v590_v40 = vmax.f32 %v542_v23, 0.0 }
  0xed   : > { %v573_v49 = vmax.f32 %v473_v44, 0.0  ;;  %v601_v55 = vpack.c.bf16 %v575_v45, %v574_v50  ;;  %v494_v60 = vadd.f32 %v1569_v46, %v2003_v1  ;;  %v537_v25 = vadd.f32 %v2003_v1, %v536_v3  ;;  %v1711_v50 = vld [vmem:[%s2214_s5 + $0x8] sm:$0xff]  }
  0xee   : > { %v485_v51 = vpop.f32.mrf.mxu0  ;;  %v1585_v16 = vpop.f32.mrf.mxu1  ;;  %v591_v42 = vmax.f32 %v545_v38, 0.0  ;;  %1647 = vmatprep.subr.bf16.mxu0 %v1711_v50 }
  0xef   : > { %v600_v52 = vpack.c.bf16 %v573_v49, %v572_v48  ;;  %v486_v58 = vadd.f32 %v2003_v1, %v485_v51  ;;  %v578_v7 = vmax.f32 %v494_v60, 0.0  ;;  %v589_v29 = vmax.f32 %v537_v25, 0.0  ;;  %1648 = vmatpush3.bf16.msra.mxu0 %v1711_v50 }
  0xf0   : > { %v1570_v56 = vpop.f32.mrf.mxu0  ;;  %v549_v21 = vpop.f32.mrf.mxu1  ;;  %v609_v44 = vpack.c.bf16 %v591_v42, %v590_v40  ;;  %v558_v45 = vadd.f32 %v1585_v16, %v2003_v1 }
  0xf1   : > { %v497_v59 = vadd.f32 %v1570_v56, %v2003_v1  ;;  %1611 = vmatprep.mubr.bf16.mxu1 %v600_v52  ;;  %v576_v4 = vmax.f32 %v486_v58, 0.0  ;;  %v608_v34 = vpack.c.bf16 %v589_v29, %v588_v28  ;;  %v550_v35 = vadd.f32 %v2003_v1, %v549_v21 }
  0xf2   : > { %v488_v61 = vpop.f32.mrf.mxu0  ;;  %1612 = vmatmul.mubr.bf16.gmra.mxu1 %v601_v55  ;;  %v1586_v27 = vpop.f32.mrf.mxu1  ;;  %v594_v47 = vmax.f32 %v558_v45, 0.0 }
  0xf3   : > { %v489_v63 = vadd.f32 %v2003_v1, %v488_v61  ;;  %v579_v2 = vmax.f32 %v497_v59, 0.0  ;;  %v592_v32 = vmax.f32 %v550_v35, 0.0  ;;  %v561_v46 = vadd.f32 %v1586_v27, %v2003_v1 }
  0xf4   : > { %v552_v33 = vpop.f32.mrf.mxu1 }
  0xf5   : > { %v577_v6 = vmax.f32 %v489_v63, 0.0  ;;  %v603_v13 = vpack.c.bf16 %v579_v2, %v578_v7  ;;  %v553_v36 = vadd.f32 %v2003_v1, %v552_v33  ;;  %v595_v48 = vmax.f32 %v561_v46, 0.0  ;;  %v1712_v1 = vld [vmem:[%s2214_s5] sm:$0xff]  }
  0xf6   : > { %1649 = vmatprep.subr.bf16.mxu0 %v1712_v1 }
  0xf7   : > { %v602_v8 = vpack.c.bf16 %v577_v6, %v576_v4  ;;  %v593_v39 = vmax.f32 %v553_v36, 0.0  ;;  %v611_v49 = vpack.c.bf16 %v595_v48, %v594_v47  ;;  %1650 = vmatpush3.bf16.msra.mxu0 %v1712_v1 }
  0xf9   : > { %1615 = vmatprep.mubr.bf16.mxu1 %v602_v8  ;;  %v610_v43 = vpack.c.bf16 %v593_v39, %v592_v32 }
  0xfa   : > { %1616 = vmatmul.mubr.bf16.gmra.mxu1 %v603_v13 }
  0xfb   : > { %1619 = vmatprep.mubr.bf16.mxu1 %v604_v9 }
 0x102   : > { %1620 = vmatmul.mubr.bf16.gmra.mxu1 %v605_v26 }
 0x103   : > { %1623 = vmatprep.mubr.bf16.mxu1 %v606_v22 }
 0x10a   : > { %1624 = vmatmul.mubr.bf16.gmra.mxu1 %v607_v37 }
 0x10b   : > { %1627 = vmatprep.mubr.bf16.mxu1 %v608_v34 }
 0x112   : > { %1628 = vmatmul.mubr.bf16.gmra.mxu1 %v609_v44 }
 0x113   : > { %1631 = vmatprep.mubr.bf16.mxu1 %v610_v43 }
 0x11a   : > { %1632 = vmatmul.mubr.bf16.gmra.mxu1 %v611_v49 }
 0x1a2   : > { %v1605_v51 = vpop.f32.mrf.mxu1 }
 0x1a3   : > { %v726_v57 = vadd.f32 %v1605_v51, %v2064_v53 }
 0x1a4   : > { %v717_v52 = vpop.f32.mrf.mxu1 }
 0x1a5   : > { %v718_v55 = vadd.f32 %v2064_v53, %v717_v52  ;;  %v846_v0 = vmax.f32 %v726_v57, 0.0 }
 0x1a6   : > { %v1606_v54 = vpop.f32.mrf.mxu1 }
 0x1a7   : > { %v729_v56 = vadd.f32 %v1606_v54, %v2064_v53  ;;  %v844_v62 = vmax.f32 %v718_v55, 0.0 }
 0x1a8   : > { %v720_v58 = vpop.f32.mrf.mxu1 }
 0x1a9   : > { %v721_v59 = vadd.f32 %v2064_v53, %v720_v58  ;;  %v847_v60 = vmax.f32 %v729_v56, 0.0 }
 0x1aa   : > { %v1609_v61 = vpop.f32.mrf.mxu1 }
 0x1ab   : > { %v845_v63 = vmax.f32 %v721_v59, 0.0  ;;  %v877_v4 = vpack.c.bf16 %v847_v60, %v846_v0  ;;  %v742_v9 = vadd.f32 %v1609_v61, %v2064_v53 }
 0x1ac   : > { %v733_v2 = vpop.f32.mrf.mxu1 }
 0x1ad   : > { %v876_v3 = vpack.c.bf16 %v845_v63, %v844_v62  ;;  %v734_v7 = vadd.f32 %v2064_v53, %v733_v2  ;;  %v850_v17 = vmax.f32 %v742_v9, 0.0 }
 0x1ae   : > { %v1610_v6 = vpop.f32.mrf.mxu1 }
 0x1af   : > { %v745_v8 = vadd.f32 %v1610_v6, %v2064_v53  ;;  %1651 = vmatprep.mubr.bf16.mxu0 %v876_v3  ;;  %v848_v15 = vmax.f32 %v734_v7, 0.0 }
 0x1b0   : > { %v736_v10 = vpop.f32.mrf.mxu1  ;;  %1652 = vmatmul.mubr.bf16.vlgmr.msra.gmra.mxu0 %v877_v4 }
 0x1b1   : > { %v737_v11 = vadd.f32 %v2064_v53, %v736_v10  ;;  %v851_v12 = vmax.f32 %v745_v8, 0.0 }
 0x1b2   : > { %v1613_v13 = vpop.f32.mrf.mxu1 }
 0x1b3   : > { %v849_v16 = vmax.f32 %v737_v11, 0.0  ;;  %v879_v20 = vpack.c.bf16 %v851_v12, %v850_v17  ;;  %v758_v25 = vadd.f32 %v1613_v13, %v2064_v53 }
 0x1b4   : > { %v749_v18 = vpop.f32.mrf.mxu1 }
 0x1b5   : > { %v878_v19 = vpack.c.bf16 %v849_v16, %v848_v15  ;;  %v750_v22 = vadd.f32 %v2064_v53, %v749_v18  ;;  %v854_v30 = vmax.f32 %v758_v25, 0.0 }
 0x1b6   : > { %v1614_v21 = vpop.f32.mrf.mxu1 }
 0x1b7   : > { %v761_v24 = vadd.f32 %v1614_v21, %v2064_v53  ;;  %1655 = vmatprep.mubr.bf16.mxu0 %v878_v19  ;;  %v852_v28 = vmax.f32 %v750_v22, 0.0 }
 0x1b8   : > { %v752_v26 = vpop.f32.mrf.mxu1  ;;  %1656 = vmatmul.mubr.bf16.gmra.mxu0 %v879_v20 }
 0x1b9   : > { %v753_v5 = vadd.f32 %v2064_v53, %v752_v26  ;;  %v855_v14 = vmax.f32 %v761_v24, 0.0 }
 0x1ba   : > { %v1617_v27 = vpop.f32.mrf.mxu1 }
 0x1bb   : > { %v853_v29 = vmax.f32 %v753_v5, 0.0  ;;  %v881_v34 = vpack.c.bf16 %v855_v14, %v854_v30  ;;  %v774_v23 = vadd.f32 %v1617_v27, %v2064_v53 }
 0x1bc   : > { %v765_v31 = vpop.f32.mrf.mxu1 }
 0x1bd   : > { %v880_v33 = vpack.c.bf16 %v853_v29, %v852_v28  ;;  %v766_v36 = vadd.f32 %v2064_v53, %v765_v31  ;;  %v858_v44 = vmax.f32 %v774_v23, 0.0 }
 0x1be   : > { %v1618_v35 = vpop.f32.mrf.mxu1 }
 0x1bf   : > { %v777_v37 = vadd.f32 %v1618_v35, %v2064_v53  ;;  %1659 = vmatprep.mubr.bf16.mxu0 %v880_v33  ;;  %v856_v42 = vmax.f32 %v766_v36, 0.0 }
 0x1c0   : > { %v768_v38 = vpop.f32.mrf.mxu1  ;;  %1660 = vmatmul.mubr.bf16.gmra.mxu0 %v881_v34 }
 0x1c1   : > { %v769_v32 = vadd.f32 %v2064_v53, %v768_v38  ;;  %v859_v39 = vmax.f32 %v777_v37, 0.0 }
 0x1c2   : > { %v1621_v40 = vpop.f32.mrf.mxu1 }
 0x1c3   : > { %v857_v43 = vmax.f32 %v769_v32, 0.0  ;;  %v883_v47 = vpack.c.bf16 %v859_v39, %v858_v44  ;;  %v790_v50 = vadd.f32 %v1621_v40, %v2064_v53  ;;  %v2101_v32 = vld [vmem:[%s2215_s6] ss:$0 sm:$0xff] }
 0x1c4   : > { %v781_v45 = vpop.f32.mrf.mxu1 }
 0x1c5   : > { %v882_v46 = vpack.c.bf16 %v857_v43, %v856_v42  ;;  %v782_v49 = vadd.f32 %v2064_v53, %v781_v45  ;;  %v862_v57 = vmax.f32 %v790_v50, 0.0 }
 0x1c6   : > { %v1622_v48 = vpop.f32.mrf.mxu1 }
 0x1c7   : > { %v793_v41 = vadd.f32 %v1622_v48, %v2064_v53  ;;  %1663 = vmatprep.mubr.bf16.mxu0 %v882_v46  ;;  %v860_v55 = vmax.f32 %v782_v49, 0.0 }
 0x1c8   : > { %v784_v1 = vpop.f32.mrf.mxu1  ;;  %1664 = vmatmul.mubr.bf16.gmra.mxu0 %v883_v47 }
 0x1c9   : > { %v785_v51 = vadd.f32 %v2064_v53, %v784_v1  ;;  %v863_v52 = vmax.f32 %v793_v41, 0.0 }
 0x1ca   : > { %v1625_v54 = vpop.f32.mrf.mxu1 }
 0x1cb   : > { %v861_v56 = vmax.f32 %v785_v51, 0.0  ;;  %v885_v60 = vpack.c.bf16 %v863_v52, %v862_v57  ;;  %v806_v0 = vadd.f32 %v1625_v54, %v2064_v53 }
 0x1cc   : > { %v797_v58 = vpop.f32.mrf.mxu1 }
 0x1cd   : > { %v884_v59 = vpack.c.bf16 %v861_v56, %v860_v55  ;;  %v798_v62 = vadd.f32 %v2064_v53, %v797_v58  ;;  %v866_v9 = vmax.f32 %v806_v0, 0.0 }
 0x1ce   : > { %v1626_v61 = vpop.f32.mrf.mxu1 }
 0x1cf   : > { %v809_v63 = vadd.f32 %v1626_v61, %v2064_v53  ;;  %1667 = vmatprep.mubr.bf16.mxu0 %v884_v59  ;;  %v864_v7 = vmax.f32 %v798_v62, 0.0 }
 0x1d0   : > { %v800_v2 = vpop.f32.mrf.mxu1  ;;  %1668 = vmatmul.mubr.bf16.gmra.mxu0 %v885_v60 }
 0x1d1   : > { %v801_v3 = vadd.f32 %v2064_v53, %v800_v2  ;;  %v867_v4 = vmax.f32 %v809_v63, 0.0 }
 0x1d2   : > { %v1629_v6 = vpop.f32.mrf.mxu1 }
 0x1d3   : > { %v865_v8 = vmax.f32 %v801_v3, 0.0  ;;  %v887_v12 = vpack.c.bf16 %v867_v4, %v866_v9  ;;  %v822_v17 = vadd.f32 %v1629_v6, %v2064_v53 }
 0x1d4   : > { %v813_v10 = vpop.f32.mrf.mxu1 }
 0x1d5   : > { %v886_v11 = vpack.c.bf16 %v865_v8, %v864_v7  ;;  %v814_v15 = vadd.f32 %v2064_v53, %v813_v10  ;;  %v870_v25 = vmax.f32 %v822_v17, 0.0 }
 0x1d6   : > { %v1630_v13 = vpop.f32.mrf.mxu1 }
 0x1d7   : > { %v825_v16 = vadd.f32 %v1630_v13, %v2064_v53  ;;  %1671 = vmatprep.mubr.bf16.mxu0 %v886_v11  ;;  %v868_v22 = vmax.f32 %v814_v15, 0.0 }
 0x1d8   : > { %v816_v18 = vpop.f32.mrf.mxu1  ;;  %1672 = vmatmul.mubr.bf16.gmra.mxu0 %v887_v12 }
 0x1d9   : > { %v817_v19 = vadd.f32 %v2064_v53, %v816_v18  ;;  %v871_v20 = vmax.f32 %v825_v16, 0.0 }
 0x1da   : > { %v1633_v21 = vpop.f32.mrf.mxu1 }
 0x1db   : > { %v869_v24 = vmax.f32 %v817_v19, 0.0  ;;  %v889_v14 = vpack.c.bf16 %v871_v20, %v870_v25  ;;  %v838_v30 = vadd.f32 %v1633_v21, %v2064_v53 }
 0x1dc   : > { %v829_v26 = vpop.f32.mrf.mxu1 }
 0x1dd   : > { %v888_v5 = vpack.c.bf16 %v869_v24, %v868_v22  ;;  %v830_v28 = vadd.f32 %v2064_v53, %v829_v26  ;;  %v874_v37 = vmax.f32 %v838_v30, 0.0 }
 0x1de   : > { %v1634_v27 = vpop.f32.mrf.mxu1 }
 0x1df   : > { %v841_v29 = vadd.f32 %v1634_v27, %v2064_v53  ;;  %1675 = vmatprep.mubr.bf16.mxu0 %v888_v5  ;;  %v872_v35 = vmax.f32 %v830_v28, 0.0 }
 0x1e0   : > { %v832_v31 = vpop.f32.mrf.mxu1  ;;  %1676 = vmatmul.mubr.bf16.gmra.mxu0 %v889_v14 }
 0x1e1   : > { %v833_v33 = vadd.f32 %v2064_v53, %v832_v31  ;;  %v875_v34 = vmax.f32 %v841_v29, 0.0 }
 0x1e3   : > { %v873_v36 = vmax.f32 %v833_v33, 0.0  ;;  %v891_v38 = vpack.c.bf16 %v875_v34, %v874_v37 }
 0x1e5   : > { %v890_v23 = vpack.c.bf16 %v873_v36, %v872_v35 }
 0x1e7   : > { %1679 = vmatprep.mubr.bf16.mxu0 %v890_v23 }
 0x1e8   : > { %1680 = vmatmul.mubr.bf16.gmra.mxu0 %v891_v38 }
 0x270   : > { %v1653_v39 = vpop.f32.mrf.mxu0 }
 0x271   : > { %v1006_v40 = vadd.f32 %v1653_v39, %v2101_v32 }
 0x272   : > { %v997_v42 = vpop.f32.mrf.mxu0 }
 0x273   : > { %v1453_v43 = vmul.f32 -1.442695, %v1006_v40  ;;  %v998_v53 = vadd.f32 %v2101_v32, %v997_v42 }
 0x274   : > { %v1654_v44 = vpop.f32.mrf.mxu0 }
 0x275   : > { %1713 = vpow2.f32 %v1453_v43  ;;  %v1451_v45 = vmul.f32 -1.442695, %v998_v53  ;;  %v1009_v46 = vadd.f32 %v1654_v44, %v2101_v32 }
 0x276   : > { %v1000_v47 = vpop.f32.mrf.mxu0 }
 0x277   : > { %1715 = vpow2.f32 %v1451_v45  ;;  %v1454_v48 = vmul.f32 -1.442695, %v1009_v46  ;;  %v1001_v49 = vadd.f32 %v2101_v32, %v1000_v47 }
 0x278   : > { %v1657_v41 = vpop.f32.mrf.mxu0 }
 0x279   : > { %1717 = vpow2.f32 %v1454_v48  ;;  %v1452_v50 = vmul.f32 -1.442695, %v1001_v49  ;;  %v1022_v1 = vadd.f32 %v1657_v41, %v2101_v32 }
 0x27a   : > { %v1013_v51 = vpop.f32.mrf.mxu0 }
 0x27b   : > { %1719 = vpow2.f32 %v1452_v50  ;;  %v1457_v52 = vmul.f32 -1.442695, %v1022_v1  ;;  %v1014_v54 = vadd.f32 %v2101_v32, %v1013_v51 }
 0x27c   : > { %v1658_v55 = vpop.f32.mrf.mxu0 }
 0x27d   : > { %1721 = vpow2.f32 %v1457_v52  ;;  %v1455_v56 = vmul.f32 -1.442695, %v1014_v54  ;;  %v1025_v57 = vadd.f32 %v1658_v55, %v2101_v32 }
 0x27e   : > { %v1016_v58 = vpop.f32.mrf.mxu0 }
 0x27f   : > { %1723 = vpow2.f32 %v1455_v56  ;;  %v1458_v59 = vmul.f32 -1.442695, %v1025_v57  ;;  %v1017_v60 = vadd.f32 %v2101_v32, %v1016_v58 }
 0x280   : > { %v1661_v61 = vpop.f32.mrf.mxu0 }
 0x281   : > { %1725 = vpow2.f32 %v1458_v59  ;;  %v1456_v62 = vmul.f32 -1.442695, %v1017_v60  ;;  %v1038_v63 = vadd.f32 %v1661_v61, %v2101_v32 }
 0x282   : > { %v1714_v0 = vpop.eup %1713  ;;  %v1029_v2 = vpop.f32.mrf.mxu0 }
 0x283   : > { %v1222_v3 = vadd.f32 1.0, %v1714_v0  ;;  %1727 = vpow2.f32 %v1456_v62  ;;  %v1461_v4 = vmul.f32 -1.442695, %v1038_v63  ;;  %v1030_v6 = vadd.f32 %v2101_v32, %v1029_v2 }
 0x284   : > { %v1716_v7 = vpop.eup %1715  ;;  %v1662_v8 = vpop.f32.mrf.mxu0 }
 0x285   : > { %1729 = vrcp.f32 %v1222_v3  ;;  %v1220_v9 = vadd.f32 1.0, %v1716_v7  ;;  %v1459_v10 = vmul.f32 -1.442695, %v1030_v6  ;;  %v1041_v11 = vadd.f32 %v1662_v8, %v2101_v32 }
 0x286   : > { %v1718_v12 = vpop.eup %1717  ;;  %1731 = vpow2.f32 %v1461_v4  ;;  %v1032_v13 = vpop.f32.mrf.mxu0 }
 0x287   : > { %1733 = vrcp.f32 %v1220_v9  ;;  %v1223_v15 = vadd.f32 1.0, %v1718_v12  ;;  %v1462_v16 = vmul.f32 -1.442695, %v1041_v11  ;;  %v1033_v17 = vadd.f32 %v2101_v32, %v1032_v13 }
 0x288   : > { %v1720_v18 = vpop.eup %1719  ;;  %1735 = vpow2.f32 %v1459_v10  ;;  %v1665_v19 = vpop.f32.mrf.mxu0 }
 0x289   : > { %1737 = vrcp.f32 %v1223_v15  ;;  %v1221_v20 = vadd.f32 1.0, %v1720_v18  ;;  %v1460_v21 = vmul.f32 -1.442695, %v1033_v17  ;;  %v1054_v22 = vadd.f32 %v1665_v19, %v2101_v32 }
 0x28a   : > { %v1722_v24 = vpop.eup %1721  ;;  %1739 = vpow2.f32 %v1462_v16  ;;  %v1045_v25 = vpop.f32.mrf.mxu0 }
 0x28b   : > { %1741 = vrcp.f32 %v1221_v20  ;;  %v1226_v26 = vadd.f32 1.0, %v1722_v24  ;;  %v1465_v5 = vmul.f32 -1.442695, %v1054_v22  ;;  %v1046_v14 = vadd.f32 %v2101_v32, %v1045_v25 }
 0x28c   : > { %v1724_v27 = vpop.eup %1723  ;;  %1743 = vpow2.f32 %v1460_v21  ;;  %v1666_v28 = vpop.f32.mrf.mxu0 }
 0x28d   : > { %1745 = vrcp.f32 %v1226_v26  ;;  %v1224_v29 = vadd.f32 1.0, %v1724_v27  ;;  %v1463_v30 = vmul.f32 -1.442695, %v1046_v14  ;;  %v1057_v31 = vadd.f32 %v1666_v28, %v2101_v32 }
 0x28e   : > { %v1726_v33 = vpop.eup %1725  ;;  %1747 = vpow2.f32 %v1465_v5  ;;  %v1048_v34 = vpop.f32.mrf.mxu0 }
 0x28f   : > { %1749 = vrcp.f32 %v1224_v29  ;;  %v1227_v35 = vadd.f32 1.0, %v1726_v33  ;;  %v1466_v36 = vmul.f32 -1.442695, %v1057_v31  ;;  %v1049_v37 = vadd.f32 %v2101_v32, %v1048_v34 }
 0x290   : > { %v1728_v23 = vpop.eup %1727  ;;  %1751 = vpow2.f32 %v1463_v30  ;;  %v1669_v38 = vpop.f32.mrf.mxu0 }
 0x291   : > { %1753 = vrcp.f32 %v1227_v35  ;;  %v1225_v39 = vadd.f32 1.0, %v1728_v23  ;;  %v1464_v40 = vmul.f32 -1.442695, %v1049_v37  ;;  %v1070_v42 = vadd.f32 %v1669_v38, %v2101_v32 }
 0x292   : > { %v1730_v43 = vpop.eup %1729  ;;  %1755 = vpow2.f32 %v1466_v36  ;;  %v1061_v53 = vpop.f32.mrf.mxu0 }
 0x293   : > { %v1732_v44 = vpop.eup %1731  ;;  %1319 = vst.msk [vmem:[%s2124_s12 + $0x10] sm:$0xff] %vm1316_vm1, %v1730_v43  ;;  %1757 = vrcp.f32 %v1225_v39  ;;  %v1469_v45 = vmul.f32 -1.442695, %v1070_v42  ;;  %v1062_v46 = vadd.f32 %v2101_v32, %v1061_v53 }
 0x294   : > { %v1734_v47 = vpop.eup %1733  ;;  %v1230_v48 = vadd.f32 1.0, %v1732_v44  ;;  %1759 = vpow2.f32 %v1464_v40  ;;  %v1670_v49 = vpop.f32.mrf.mxu0 }
 0x295   : > { %v1736_v41 = vpop.eup %1735  ;;  %1317 = vst.msk [vmem:[%s2124_s12] sm:$0xff] %vm1316_vm1, %v1734_v47  ;;  %1761 = vpow2.f32 %v1469_v45  ;;  %v1467_v50 = vmul.f32 -1.442695, %v1062_v46  ;;  %v1073_v1 = vadd.f32 %v1670_v49, %v2101_v32 }
 0x296   : > { %v1738_v51 = vpop.eup %1737  ;;  %1763 = vrcp.f32 %v1230_v48  ;;  %v1228_v52 = vadd.f32 1.0, %v1736_v41  ;;  %v1064_v54 = vpop.f32.mrf.mxu0 }
 0x297   : > { %v1740_v55 = vpop.eup %1739  ;;  %1320 = vst.msk [vmem:[%s2124_s12 + $0x18] sm:$0xff] %vm1316_vm1, %v1738_v51  ;;  %1765 = vpow2.f32 %v1467_v50  ;;  %v1470_v56 = vmul.f32 -1.442695, %v1073_v1  ;;  %v1065_v57 = vadd.f32 %v2101_v32, %v1064_v54 }
 0x298   : > { %v1742_v58 = vpop.eup %1741  ;;  %1767 = vrcp.f32 %v1228_v52  ;;  %v1231_v59 = vadd.f32 1.0, %v1740_v55  ;;  %v1673_v60 = vpop.f32.mrf.mxu0 }
 0x299   : > { %v1744_v61 = vpop.eup %1743  ;;  %1318 = vst.msk [vmem:[%s2124_s12 + $0x8] sm:$0xff] %vm1316_vm1, %v1742_v58  ;;  %1769 = vpow2.f32 %v1470_v56  ;;  %v1468_v62 = vmul.f32 -1.442695, %v1065_v57  ;;  %v1086_v63 = vadd.f32 %v1673_v60, %v2101_v32 }
 0x29a   : > { %v1746_v0 = vpop.eup %1745  ;;  %1771 = vrcp.f32 %v1231_v59  ;;  %v1229_v2 = vadd.f32 1.0, %v1744_v61  ;;  %v1077_v3 = vpop.f32.mrf.mxu0 }
 0x29b   : > { %v1748_v4 = vpop.eup %1747  ;;  %1323 = vst.msk [vmem:[%s2124_s12 + $0x30] sm:$0xff] %vm1316_vm1, %v1746_v0  ;;  %1773 = vpow2.f32 %v1468_v62  ;;  %v1473_v6 = vmul.f32 -1.442695, %v1086_v63  ;;  %v1078_v7 = vadd.f32 %v2101_v32, %v1077_v3 }
 0x29c   : > { %v1750_v8 = vpop.eup %1749  ;;  %1775 = vrcp.f32 %v1229_v2  ;;  %v1234_v9 = vadd.f32 1.0, %v1748_v4  ;;  %v1674_v10 = vpop.f32.mrf.mxu0 }
 0x29d   : > { %v1752_v11 = vpop.eup %1751  ;;  %1321 = vst.msk [vmem:[%s2124_s12 + $0x20] sm:$0xff] %vm1316_vm1, %v1750_v8  ;;  %1777 = vpow2.f32 %v1473_v6  ;;  %v1471_v12 = vmul.f32 -1.442695, %v1078_v7  ;;  %v1089_v13 = vadd.f32 %v1674_v10, %v2101_v32 }
 0x29e   : > { %v1754_v15 = vpop.eup %1753  ;;  %1779 = vrcp.f32 %v1234_v9  ;;  %v1232_v16 = vadd.f32 1.0, %v1752_v11  ;;  %v1080_v17 = vpop.f32.mrf.mxu0 }
 0x29f   : > { %v1756_v18 = vpop.eup %1755  ;;  %1324 = vst.msk [vmem:[%s2124_s12 + $0x38] sm:$0xff] %vm1316_vm1, %v1754_v15  ;;  %1781 = vpow2.f32 %v1471_v12  ;;  %v1474_v19 = vmul.f32 -1.442695, %v1089_v13  ;;  %v1081_v20 = vadd.f32 %v2101_v32, %v1080_v17 }
 0x2a0   : > { %v1758_v21 = vpop.eup %1757  ;;  %1783 = vrcp.f32 %v1232_v16  ;;  %v1235_v22 = vadd.f32 1.0, %v1756_v18  ;;  %v1677_v24 = vpop.f32.mrf.mxu0 }
 0x2a1   : > { %v1760_v25 = vpop.eup %1759  ;;  %1322 = vst.msk [vmem:[%s2124_s12 + $0x28] sm:$0xff] %vm1316_vm1, %v1758_v21  ;;  %1785 = vpow2.f32 %v1474_v19  ;;  %v1472_v26 = vmul.f32 -1.442695, %v1081_v20  ;;  %v1102_v5 = vadd.f32 %v1677_v24, %v2101_v32 }
 0x2a2   : > { %v1762_v14 = vpop.eup %1761  ;;  %1787 = vrcp.f32 %v1235_v22  ;;  %v1233_v27 = vadd.f32 1.0, %v1760_v25  ;;  %v1093_v28 = vpop.f32.mrf.mxu0 }
 0x2a3   : > { %v1764_v29 = vpop.eup %1763  ;;  %v1238_v30 = vadd.f32 1.0, %v1762_v14  ;;  %1789 = vpow2.f32 %v1472_v26  ;;  %v1477_v31 = vmul.f32 -1.442695, %v1102_v5  ;;  %v1094_v33 = vadd.f32 %v2101_v32, %v1093_v28 }
 0x2a4   : > { %v1766_v34 = vpop.eup %1765  ;;  %1327 = vst.msk [vmem:[%s2124_s12 + $0x50] sm:$0xff] %vm1316_vm1, %v1764_v29  ;;  %1791 = vrcp.f32 %v1233_v27  ;;  %v1678_v35 = vpop.f32.mrf.mxu0 }
 0x2a5   : > { %v1768_v36 = vpop.eup %1767  ;;  %1793 = vrcp.f32 %v1238_v30  ;;  %v1236_v37 = vadd.f32 1.0, %v1766_v34  ;;  %v1475_v23 = vmul.f32 -1.442695, %v1094_v33  ;;  %v1105_v38 = vadd.f32 %v1678_v35, %v2101_v32 }
 0x2a6   : > { %v1770_v39 = vpop.eup %1769  ;;  %1325 = vst.msk [vmem:[%s2124_s12 + $0x40] sm:$0xff] %vm1316_vm1, %v1768_v36  ;;  %1795 = vpow2.f32 %v1477_v31  ;;  %v1096_v40 = vpop.f32.mrf.mxu0 }
 0x2a7   : > { %v1772_v42 = vpop.eup %1771  ;;  %1797 = vrcp.f32 %v1236_v37  ;;  %v1239_v43 = vadd.f32 1.0, %v1770_v39  ;;  %v1478_v53 = vmul.f32 -1.442695, %v1105_v38  ;;  %v1097_v44 = vadd.f32 %v2101_v32, %v1096_v40 }
 0x2a8   : > { %v1774_v45 = vpop.eup %1773  ;;  %1328 = vst.msk [vmem:[%s2124_s12 + $0x58] sm:$0xff] %vm1316_vm1, %v1772_v42  ;;  %1799 = vpow2.f32 %v1475_v23  ;;  %v1681_v46 = vpop.f32.mrf.mxu0 }
 0x2a9   : > { %v1776_v47 = vpop.eup %1775  ;;  %1801 = vrcp.f32 %v1239_v43  ;;  %v1237_v48 = vadd.f32 1.0, %v1774_v45  ;;  %v1476_v49 = vmul.f32 -1.442695, %v1097_v44  ;;  %v1118_v41 = vadd.f32 %v1681_v46, %v2101_v32 }
 0x2aa   : > { %v1778_v50 = vpop.eup %1777  ;;  %1326 = vst.msk [vmem:[%s2124_s12 + $0x48] sm:$0xff] %vm1316_vm1, %v1776_v47  ;;  %1803 = vpow2.f32 %v1478_v53  ;;  %v1109_v1 = vpop.f32.mrf.mxu0 }
 0x2ab   : > { %v1780_v51 = vpop.eup %1779  ;;  %1805 = vrcp.f32 %v1237_v48  ;;  %v1242_v52 = vadd.f32 1.0, %v1778_v50  ;;  %v1481_v54 = vmul.f32 -1.442695, %v1118_v41  ;;  %v1110_v55 = vadd.f32 %v2101_v32, %v1109_v1 }
 0x2ac   : > { %v1782_v56 = vpop.eup %1781  ;;  %1331 = vst.msk [vmem:[%s2124_s12 + $0x70] sm:$0xff] %vm1316_vm1, %v1780_v51  ;;  %1807 = vpow2.f32 %v1476_v49  ;;  %v1682_v57 = vpop.f32.mrf.mxu0 }
 0x2ad   : > { %v1784_v58 = vpop.eup %1783  ;;  %1809 = vrcp.f32 %v1242_v52  ;;  %v1240_v59 = vadd.f32 1.0, %v1782_v56  ;;  %v1479_v60 = vmul.f32 -1.442695, %v1110_v55  ;;  %v1121_v61 = vadd.f32 %v1682_v57, %v2101_v32 }
 0x2ae   : > { %v1786_v62 = vpop.eup %1785  ;;  %1329 = vst.msk [vmem:[%s2124_s12 + $0x60] sm:$0xff] %vm1316_vm1, %v1784_v58  ;;  %1811 = vpow2.f32 %v1481_v54  ;;  %v1112_v63 = vpop.f32.mrf.mxu0 }
 0x2af   : > { %v1788_v0 = vpop.eup %1787  ;;  %1813 = vrcp.f32 %v1240_v59  ;;  %v1243_v2 = vadd.f32 1.0, %v1786_v62  ;;  %v1482_v3 = vmul.f32 -1.442695, %v1121_v61  ;;  %v1113_v4 = vadd.f32 %v2101_v32, %v1112_v63 }
 0x2b0   : > { %v1790_v6 = vpop.eup %1789  ;;  %1332 = vst.msk [vmem:[%s2124_s12 + $0x78] sm:$0xff] %vm1316_vm1, %v1788_v0  ;;  %1815 = vpow2.f32 %v1479_v60 }
 0x2b1   : > { %v1792_v7 = vpop.eup %1791  ;;  %1817 = vrcp.f32 %v1243_v2  ;;  %v1241_v8 = vadd.f32 1.0, %v1790_v6  ;;  %v1480_v9 = vmul.f32 -1.442695, %v1113_v4 }
 0x2b2   : > { %v1794_v10 = vpop.eup %1793  ;;  %1330 = vst.msk [vmem:[%s2124_s12 + $0x68] sm:$0xff] %vm1316_vm1, %v1792_v7  ;;  %1819 = vpow2.f32 %v1482_v3 }
 0x2b3   : > { %v1796_v11 = vpop.eup %1795  ;;  %1335 = vst.msk [vmem:[%s2124_s12 + $0x90] sm:$0xff] %vm1316_vm1, %v1794_v10  ;;  %1821 = vrcp.f32 %v1241_v8 }
 0x2b4   : > { %v1798_v32 = vpop.eup %1797  ;;  %v1246_v12 = vadd.f32 1.0, %v1796_v11  ;;  %1823 = vpow2.f32 %v1480_v9 }
 0x2b5   : > { %v1800_v13 = vpop.eup %1799  ;;  %1333 = vst.msk [vmem:[%s2124_s12 + $0x80] sm:$0xff] %vm1316_vm1, %v1798_v32 }
 0x2b6   : > { %v1802_v15 = vpop.eup %1801  ;;  %1825 = vrcp.f32 %v1246_v12  ;;  %v1244_v16 = vadd.f32 1.0, %v1800_v13 }
 0x2b7   : > { %v1804_v17 = vpop.eup %1803  ;;  %1336 = vst.msk [vmem:[%s2124_s12 + $0x98] sm:$0xff] %vm1316_vm1, %v1802_v15 }
 0x2b8   : > { %v1806_v18 = vpop.eup %1805  ;;  %1827 = vrcp.f32 %v1244_v16  ;;  %v1247_v19 = vadd.f32 1.0, %v1804_v17 }
 0x2b9   : > { %v1808_v20 = vpop.eup %1807  ;;  %1334 = vst.msk [vmem:[%s2124_s12 + $0x88] sm:$0xff] %vm1316_vm1, %v1806_v18 }
 0x2ba   : > { %v1810_v21 = vpop.eup %1809  ;;  %1829 = vrcp.f32 %v1247_v19  ;;  %v1245_v22 = vadd.f32 1.0, %v1808_v20 }
 0x2bb   : > { %v1812_v24 = vpop.eup %1811  ;;  %1339 = vst.msk [vmem:[%s2124_s12 + $0xb0] sm:$0xff] %vm1316_vm1, %v1810_v21 }
 0x2bc   : > { %v1814_v25 = vpop.eup %1813  ;;  %1831 = vrcp.f32 %v1245_v22  ;;  %v1250_v26 = vadd.f32 1.0, %v1812_v24 }
 0x2bd   : > { %v1816_v5 = vpop.eup %1815  ;;  %1337 = vst.msk [vmem:[%s2124_s12 + $0xa0] sm:$0xff] %vm1316_vm1, %v1814_v25 }
 0x2be   : > { %v1818_v14 = vpop.eup %1817  ;;  %1833 = vrcp.f32 %v1250_v26  ;;  %v1248_v27 = vadd.f32 1.0, %v1816_v5 }
 0x2bf   : > { %v1820_v28 = vpop.eup %1819  ;;  %1340 = vst.msk [vmem:[%s2124_s12 + $0xb8] sm:$0xff] %vm1316_vm1, %v1818_v14 }
 0x2c0   : > { %v1822_v29 = vpop.eup %1821  ;;  %1835 = vrcp.f32 %v1248_v27  ;;  %v1251_v30 = vadd.f32 1.0, %v1820_v28 }
 0x2c1   : > { %v1824_v31 = vpop.eup %1823  ;;  %1338 = vst.msk [vmem:[%s2124_s12 + $0xa8] sm:$0xff] %vm1316_vm1, %v1822_v29 }
 0x2c2   : > { %1837 = vrcp.f32 %v1251_v30  ;;  %v1249_v33 = vadd.f32 1.0, %v1824_v31 }
 0x2c3   : > { %v1826_v34 = vpop.eup %1825 }
 0x2c4   : > { %1343 = vst.msk [vmem:[%s2124_s12 + $0xd0] sm:$0xff] %vm1316_vm1, %v1826_v34  ;;  %1839 = vrcp.f32 %v1249_v33 }
 0x2c5   : > { %v1828_v35 = vpop.eup %1827 }
 0x2c6   : > { %1341 = vst.msk [vmem:[%s2124_s12 + $0xc0] sm:$0xff] %vm1316_vm1, %v1828_v35 }
 0x2c7   : > { %v1830_v36 = vpop.eup %1829 }
 0x2c8   : > { %1344 = vst.msk [vmem:[%s2124_s12 + $0xd8] sm:$0xff] %vm1316_vm1, %v1830_v36 }
 0x2c9   : > { %v1832_v37 = vpop.eup %1831 }
 0x2ca   : > { %1342 = vst.msk [vmem:[%s2124_s12 + $0xc8] sm:$0xff] %vm1316_vm1, %v1832_v37 }
 0x2cb   : > { %v1834_v23 = vpop.eup %1833 }
 0x2cc   : > { %1347 = vst.msk [vmem:[%s2124_s12 + $0xf0] sm:$0xff] %vm1316_vm1, %v1834_v23 }
 0x2cd   : > { %v1836_v38 = vpop.eup %1835 }
 0x2ce   : > { %1345 = vst.msk [vmem:[%s2124_s12 + $0xe0] sm:$0xff] %vm1316_vm1, %v1836_v38 }
 0x2cf   : > { %v1838_v39 = vpop.eup %1837 }
 0x2d0   : > { %1348 = vst.msk [vmem:[%s2124_s12 + $0xf8] sm:$0xff] %vm1316_vm1, %v1838_v39 }
 0x2d1   : > { %v1840_v40 = vpop.eup %1839 }
 0x2d2   : > { %1346 = vst.msk [vmem:[%s2124_s12 + $0xe8] sm:$0xff] %vm1316_vm1, %v1840_v40 }
 0x2d3 PF: > { %s17_s24 = sadd.s32 1, %s1847_s24  }
 0x2d4   : > { %p14_p4 = scmp.ge.s32.totalorder %s17_s24, 4  }
 0x2d6   :  { %16 = sbr.rel (!%p14_p4) target bundleno = 1 (0x1), region = 78 }

</bundles_post_ra>
